<compile_context>
chip_gen: v7x
topology: tpu7x:2x2x1
jax: 0.10.0
libtpu: 0.0.40
codegen_flags: <defaults>
</compile_context>

<pallas_src>
import functools

import jax
import jax.numpy as jnp
from jax.experimental import pallas as pl
from jax.experimental.pallas import tpu as pltpu

P = 8          # pixels removed from each spatial border when cropping to 84
IN_W = 100     # module requires input width == 100 on the crop path


def _cdiv(a, b):
    return -(-a // b)


def _align_up(a, m):
    return _cdiv(a, m) * m


def _padded_image_bytes(rows, cols, itemsize):
    """Per-image VMEM footprint with (sublane, lane) padding for this dtype."""
    sublane_pack = 8 * max(1, 4 // itemsize)       # 8 f32 / 16 bf16 / 32 int8
    return _align_up(rows, sublane_pack) * _align_up(cols, 128) * itemsize


def _num_tensorcores():
    """Best-effort TensorCore count (v7x has 2/chip); default to 1."""
    try:
        info = pltpu.get_tpu_info()
        for attr in ("num_cores", "core_count", "num_tensorcores",
                     "tensorcore_count", "num_cores_per_chip"):
            v = getattr(info, attr, None)
            if v:
                return int(v)
    except Exception:
        pass
    try:
        d = jax.devices()[0]
        for attr in ("num_cores", "core_count"):
            v = getattr(d, attr, None)
            if v:
                return int(v)
    except Exception:
        pass
    return 1


def _choose_block_images(n, in_rows, in_cols, out_h, out_w, itemsize, num_cores):
    """Images per grid step.

    Returns (tc, exact). Sized from a raw-input byte target (HBM roofline
    ladder wants >= ~1-4 MB blocks) and a padded double-buffered VMEM budget
    that fits v5e's 16 MiB default scoped VMEM. Prefers an exact divisor of n
    near the target; otherwise the caller uses a cdiv grid (partial last
    block) - never the old tc=1 cliff.
    """
    TARGET_IN_BYTES = 4 << 20     # ~4 MiB of raw input per grid step
    VMEM_BUDGET = 10 << 20        # padded, double-buffered in+out; < 16 MiB

    per_img_raw_in = in_rows * in_cols * itemsize
    per_img_vmem = 2 * (_padded_image_bytes(in_rows, in_cols, itemsize)
                        + _padded_image_bytes(out_h, out_w, itemsize))
    cap = max(1, min(TARGET_IN_BYTES // per_img_raw_in,
                     VMEM_BUDGET // per_img_vmem))
    tc = min(n, cap)

    if num_cores > 1:
        # >= 2 steps per TensorCore when N allows, so each core overlaps
        # prefetch / compute / writeback. Do NOT shrink blocks on 1-TC chips.
        min_steps = 2 * num_cores
        tc = min(tc, max(1, _cdiv(n, min_steps)))

    # Prefer an exact divisor within 2x of the target (no partial block).
    for d in range(tc, max(1, tc // 2) - 1, -1):
        if n % d == 0:
            return d, True
    return tc, False


def _crop_kernel(x_ref, o_ref, *, row0, out_h, out_w):
    # x_ref: (tc, rows, W) VMEM tile; o_ref: (tc, out_h, out_w) VMEM tile.
    # Static slice (sublane offset row0, lane offset P), then dense store.
    o_ref[...] = x_ref[:, row0:row0 + out_h, P:P + out_w]


def _launch(xf, N, H, W, out_h, out_w, itemsize, num_cores, *, dma_h_crop):
    if dma_h_crop:
        # 8-aligned 88-row window [P, P+88) fetched by the pipeline DMA;
        # kernel keeps rows [0, out_h) of the window and lane-crops W.
        in_rows = _align_up(out_h, 8)               # 88
        assert P % 8 == 0 and P + in_rows <= H
        in_spec = pl.BlockSpec((None, pl.Element(in_rows), W)[1:] if False else
                               (0,))  # placeholder, replaced below
        in_spec = pl.BlockSpec((0,))  # placeholder, replaced below
        row0 = 0
    else:
        in_rows = H
        row0 = P

    tc, exact = _choose_block_images(N, in_rows, W, out_h, out_w,
                                     itemsize, num_cores)
    grid = (N // tc,) if exact else (_cdiv(N, tc),)

    if dma_h_crop:
        in_spec = pl.BlockSpec((tc, pl.Element(in_rows), W),
                               lambda i: (i, P, 0))
    else:
        in_spec = pl.BlockSpec((tc, H, W), lambda i: (i, 0, 0))

    kernel = functools.partial(_crop_kernel, row0=row0,
                               out_h=out_h, out_w=out_w)

    out = pl.pallas_call(
        kernel,
        out_shape=jax.ShapeDtypeStruct((N, out_h, out_w), xf.dtype),
        grid_spec=pltpu.PrefetchScalarGridSpec(
            num_scalar_prefetch=0,
            grid=grid,
            in_specs=[in_spec],
            out_specs=pl.BlockSpec((tc, out_h, out_w), lambda i: (i, 0, 0)),
        ),
        compiler_params=pltpu.CompilerParams(
            dimension_semantics=("parallel",),
        ),
    )(xf)
    # Block here so any lowering / runtime error surfaces inside the caller's
    # try-block (the Element path falls back if it does not lower).
    return jax.block_until_ready(out)


def center_crop(x, size=84):
    """JAX/Pallas equivalent of CenterCrop(size).forward(x). x is NCHW."""
    assert size in (84, 100), f"unexpected size: {size}"
    assert x.ndim == 4, "input must be a 4D tensor"
    B, C, H, W = x.shape
    if H == size and W == size:
        return x
    assert W == IN_W, f"unexpected size: {W}"
    assert size == 84  # only size==84 defines p in the reference module

    out_h = H - 2 * P
    out_w = W - 2 * P

    # Fuse batch and channel dims (free reshape of leading dims) so each grid
    # step moves a fat contiguous block instead of a single 33-40 KB image.
    N = B * C
    xf = x.reshape(N, H, W)
    itemsize = jnp.dtype(x.dtype).itemsize
    num_cores = _num_tensorcores()

    try:
        # Preferred: H crop done by the pipeline DMA (fewer HBM read bytes).
        out = _launch(xf, N, H, W, out_h, out_w, itemsize, num_cores,
                      dma_h_crop=True)
    except Exception:
        # Fallback: full-height input block, crop entirely in-kernel
        # (identical structure to the previously verified-clean kernel).
        out = _launch(xf, N, H, W, out_h, out_w, itemsize, num_cores,
                      dma_h_crop=False)
    return out.reshape(B, C, out_h, out_w)


if __name__ == "__main__":
    key = jax.random.PRNGKey(0)
    # Module semantics require spatial width == 100 on the crop path.
    x = jax.random.normal(key, (2, 4, 100, 100), dtype=jnp.float32)

    out = center_crop(x, size=84)
    out = jax.block_until_ready(out)

    # Reference check against plain slicing.
    ref = x[:, :, P:-P, P:-P]
    assert out.shape == (2, 4, 84, 84), out.shape
    assert jnp.array_equal(out, ref), "mismatch vs reference slice"

    # Pass-through case (already 84x84) returns the input unchanged.
    x84 = jax.random.normal(jax.random.PRNGKey(1), (2, 4, 84, 84),
                            dtype=jnp.float32)
    out84 = jax.block_until_ready(center_crop(x84, size=84))
    assert out84 is x84

    # dtype-preserving path (bandwidth scales with dtype width).
    xb = (jax.random.normal(jax.random.PRNGKey(2), (2, 4, 100, 100)) * 10
          ).astype(jnp.bfloat16)
    outb = jax.block_until_ready(center_crop(xb, size=84))
    assert outb.dtype == jnp.bfloat16
    assert jnp.array_equal(outb, xb[:, :, P:-P, P:-P])

    print("KERNEL_OK")
</pallas_src>

<mosaic_0001>
module attributes {stable_mosaic.version = 11 : i64} {
  func.func @_crop_kernel(%arg0: i32, %arg1: memref<8x100x100xf32, #tpu.memory_space<vmem>>, %arg2: memref<8x84x84xf32, #tpu.memory_space<vmem>>) attributes {dimension_semantics = [#tpu.dimension_semantics<parallel>], iteration_bounds = array<i64: 1>, scalar_prefetch = 0 : i64, scratch_operands = 0 : i64, tpu.core_type = #tpu.core_type<tc>, window_params = [{transform_indices = @transform_0, window_bounds = array<i64: 8, 100, 100>}, {transform_indices = @transform_1, window_bounds = array<i64: 8, 84, 84>}]} {
    %c0 = arith.constant 0 : index
    %c8 = arith.constant 8 : index
    %c8_0 = arith.constant 8 : index
    %0 = vector.load %arg1[%c0, %c8, %c8_0] : memref<8x100x100xf32, #tpu.memory_space<vmem>>, vector<8x84x84xf32>
    %c0_1 = arith.constant 0 : index
    %c0_2 = arith.constant 0 : index
    %c0_3 = arith.constant 0 : index
    %1 = vector.load %arg2[%c0_1, %c0_2, %c0_3] : memref<8x84x84xf32, #tpu.memory_space<vmem>>, vector<8x84x84xf32>
    tpu.vector_store %arg2[%c0_1, %c0_2, %c0_3], %0 {strides = array<i32>} : memref<8x84x84xf32, #tpu.memory_space<vmem>>, vector<8x84x84xf32>,
    return
  }
  func.func @transform_0(%arg0: i32) -> (i32, i32, i32) {
    %c0_i32 = arith.constant 0 : i32
    %c0_i32_0 = arith.constant 0 : i32
    %c0_i32_1 = arith.constant 0 : i32
    return %arg0, %c0_i32, %c0_i32_0 : i32, i32, i32
  }
  func.func @transform_1(%arg0: i32) -> (i32, i32, i32) {
    %c0_i32 = arith.constant 0 : i32
    %c0_i32_0 = arith.constant 0 : i32
    %c0_i32_1 = arith.constant 0 : i32
    return %arg0, %c0_i32, %c0_i32_0 : i32, i32, i32
  }
}

</mosaic_0001>

<bundles_post_ra>
// kernel: tpu_custom_call.1
= control target key start
LH: loop header
LB: loop body
LE: loop exit
PB: predicated region body
PF: predicated region fallthrough
CT: control target
= control target key end

     0   :  { %s543_s10 = smov 120   ;;  %vm448_vm0 = vcmask 687104   ;;  %vm459_vm1 = vcmask 683008   ;;  %s1258_s0 = inlined_call_operand.vmem [shape: f32[8,100,100], index: 0, kind: input, shape index: {}]   ;;  %s1259_s1 = inlined_call_operand.vmem [shape: f32[8,84,84], index: 1, kind: output, shape index: {}]  }
   0x1   :  { %v10_v0 = vld [vmem:[%s1258_s0 + $0x18] sm:$0xff]  ;;  %v8_v1 = vld [vmem:[%s1258_s0 + $0x8] sm:$0xff]  ;;  %v11_v2 = vld [vmem:[%s1258_s0 + $0x20] sm:$0xff] }
   0x2   :  { %188 = vrot.lane.b32.xlu1 %v10_v0, %s543_s10  ;;  %184 = vrot.lane.b32.xlu0 %v8_v1, %s543_s10  ;;  %v9_v3 = vld [vmem:[%s1258_s0 + $0x10] sm:$0xff]  ;;  %v12_v5 = vld [vmem:[%s1258_s0 + $0x28] sm:$0xff] }
   0x3   :  { %v13_v4 = vld [vmem:[%s1258_s0 + $0x30] sm:$0xff]  ;;  %v15_v6 = vld [vmem:[%s1258_s0 + $0x40] sm:$0xff]  ;;  %v14_v7 = vld [vmem:[%s1258_s0 + $0x38] sm:$0xff] }
   0x4   :  { %v17_v8 = vld [vmem:[%s1258_s0 + $0x50] sm:$0xff]  ;;  %v16_v9 = vld [vmem:[%s1258_s0 + $0x48] sm:$0xff]  ;;  %v18_v11 = vld [vmem:[%s1258_s0 + $0x58] sm:$0xf] }
   0x5   :  { %v19_v10 = vld [vmem:[%s1258_s0 + $0x70] sm:$0xff]  ;;  %v21_v12 = vld [vmem:[%s1258_s0 + $0x80] sm:$0xff]  ;;  %v20_v13 = vld [vmem:[%s1258_s0 + $0x78] sm:$0xff] }
   0x6   :  { %190 = vrot.lane.b32.xlu1 %v11_v2, %s543_s10  ;;  %186 = vrot.lane.b32.xlu0 %v9_v3, %s543_s10  ;;  %v23_v14 = vld [vmem:[%s1258_s0 + $0x90] sm:$0xff]  ;;  %v22_v15 = vld [vmem:[%s1258_s0 + $0x88] sm:$0xff] }
   0x7   :  { %v25_v16 = vld [vmem:[%s1258_s0 + $0xa0] sm:$0xff]  ;;  %v24_v17 = vld [vmem:[%s1258_s0 + $0x98] sm:$0xff]  ;;  %v27_v18 = vld [vmem:[%s1258_s0 + $0xb0] sm:$0xff] }
   0x8   :  { %v26_v19 = vld [vmem:[%s1258_s0 + $0xa8] sm:$0xff]  ;;  %v29_v20 = vld [vmem:[%s1258_s0 + $0xc0] sm:$0xf]  ;;  %v28_v21 = vld [vmem:[%s1258_s0 + $0xb8] sm:$0xff] }
   0x9   :  { %v31_v22 = vld [vmem:[%s1258_s0 + $0xe0] sm:$0xff]  ;;  %v30_v23 = vld [vmem:[%s1258_s0 + $0xd8] sm:$0xff]  ;;  %v33_v24 = vld [vmem:[%s1258_s0 + $0xf0] sm:$0xff] }
   0xa   :  { %194 = vrot.lane.b32.xlu1 %v13_v4, %s543_s10  ;;  %192 = vrot.lane.b32.xlu0 %v12_v5, %s543_s10  ;;  %v32_v25 = vld [vmem:[%s1258_s0 + $0xe8] sm:$0xff]  ;;  %v35_v26 = vld [vmem:[%s1258_s0 + $0x100] sm:$0xff] }
   0xb   :  { %v34_v27 = vld [vmem:[%s1258_s0 + $0xf8] sm:$0xff]  ;;  %v37_v28 = vld [vmem:[%s1258_s0 + $0x110] sm:$0xff]  ;;  %v36_v29 = vld [vmem:[%s1258_s0 + $0x108] sm:$0xff] }
   0xc   :  { %v39_v30 = vld [vmem:[%s1258_s0 + $0x120] sm:$0xff]  ;;  %v38_v31 = vld [vmem:[%s1258_s0 + $0x118] sm:$0xff]  ;;  %v40_v33 = vld [vmem:[%s1258_s0 + $0x128] sm:$0xf] }
   0xd   :  { %v41_v32 = vld [vmem:[%s1258_s0 + $0x140] sm:$0xff]  ;;  %v43_v34 = vld [vmem:[%s1258_s0 + $0x150] sm:$0xff]  ;;  %v42_v35 = vld [vmem:[%s1258_s0 + $0x148] sm:$0xff] }
   0xe   :  { %198 = vrot.lane.b32.xlu1 %v15_v6, %s543_s10  ;;  %196 = vrot.lane.b32.xlu0 %v14_v7, %s543_s10  ;;  %v45_v36 = vld [vmem:[%s1258_s0 + $0x160] sm:$0xff]  ;;  %v44_v37 = vld [vmem:[%s1258_s0 + $0x158] sm:$0xff] }
   0xf   :  { %v47_v38 = vld [vmem:[%s1258_s0 + $0x170] sm:$0xff]  ;;  %v46_v39 = vld [vmem:[%s1258_s0 + $0x168] sm:$0xff]  ;;  %v49_v40 = vld [vmem:[%s1258_s0 + $0x180] sm:$0xff] }
  0x10   :  { %v48_v41 = vld [vmem:[%s1258_s0 + $0x178] sm:$0xff]  ;;  %v51_v42 = vld [vmem:[%s1258_s0 + $0x190] sm:$0xf]  ;;  %v50_v43 = vld [vmem:[%s1258_s0 + $0x188] sm:$0xff] }
  0x11   :  { %v53_v44 = vld [vmem:[%s1258_s0 + $0x1b0] sm:$0xff]  ;;  %v52_v45 = vld [vmem:[%s1258_s0 + $0x1a8] sm:$0xff]  ;;  %v55_v46 = vld [vmem:[%s1258_s0 + $0x1c0] sm:$0xff] }
  0x12   :  { %202 = vrot.lane.b32.xlu1 %v17_v8, %s543_s10  ;;  %200 = vrot.lane.b32.xlu0 %v16_v9, %s543_s10  ;;  %v54_v47 = vld [vmem:[%s1258_s0 + $0x1b8] sm:$0xff]  ;;  %v57_v48 = vld [vmem:[%s1258_s0 + $0x1d0] sm:$0xff] }
  0x13   :  { %v56_v49 = vld [vmem:[%s1258_s0 + $0x1c8] sm:$0xff]  ;;  %v59_v50 = vld [vmem:[%s1258_s0 + $0x1e0] sm:$0xff]  ;;  %v58_v51 = vld [vmem:[%s1258_s0 + $0x1d8] sm:$0xff] }
  0x14   :  { %v61_v52 = vld [vmem:[%s1258_s0 + $0x1f0] sm:$0xff]  ;;  %v60_v53 = vld [vmem:[%s1258_s0 + $0x1e8] sm:$0xff]  ;;  %v62_v55 = vld [vmem:[%s1258_s0 + $0x1f8] sm:$0xf] }
  0x15   :  { %v63_v54 = vld [vmem:[%s1258_s0 + $0x210] sm:$0xff]  ;;  %v65_v56 = vld [vmem:[%s1258_s0 + $0x220] sm:$0xff]  ;;  %v64_v57 = vld [vmem:[%s1258_s0 + $0x218] sm:$0xff] }
  0x16   :  { %206 = vrot.lane.b32.xlu1 %v19_v10, %s543_s10  ;;  %204 = vrot.lane.b32.xlu0 %v18_v11, %s543_s10  ;;  %v67_v58 = vld [vmem:[%s1258_s0 + $0x230] sm:$0xff]  ;;  %v66_v59 = vld [vmem:[%s1258_s0 + $0x228] sm:$0xff] }
  0x17   :  { %v69_v62 = vld [vmem:[%s1258_s0 + $0x240] sm:$0xff]  ;;  %v68_v63 = vld [vmem:[%s1258_s0 + $0x238] sm:$0xff]  ;;  %v71_v2 = vld [vmem:[%s1258_s0 + $0x250] sm:$0xff] }
  0x18   :  { %v70_v3 = vld [vmem:[%s1258_s0 + $0x248] sm:$0xff]  ;;  %v73_v6 = vld [vmem:[%s1258_s0 + $0x260] sm:$0xf]  ;;  %v72_v7 = vld [vmem:[%s1258_s0 + $0x258] sm:$0xff] }
  0x19   :  { %v75_v10 = vld [vmem:[%s1258_s0 + $0x280] sm:$0xff]  ;;  %v74_v11 = vld [vmem:[%s1258_s0 + $0x278] sm:$0xff] }
  0x1a   :  { %210 = vrot.lane.b32.xlu1 %v21_v12, %s543_s10  ;;  %208 = vrot.lane.b32.xlu0 %v20_v13, %s543_s10 }
  0x1e   :  { %214 = vrot.lane.b32.xlu1 %v23_v14, %s543_s10  ;;  %212 = vrot.lane.b32.xlu0 %v22_v15, %s543_s10  ;;  %v77_v14 = vld [vmem:[%s1258_s0 + $0x290] sm:$0xff]  ;;  %v76_v15 = vld [vmem:[%s1258_s0 + $0x288] sm:$0xff] }
  0x22   :  { %218 = vrot.lane.b32.xlu1 %v25_v16, %s543_s10  ;;  %216 = vrot.lane.b32.xlu0 %v24_v17, %s543_s10 }
  0x26   :  { %222 = vrot.lane.b32.xlu1 %v27_v18, %s543_s10  ;;  %220 = vrot.lane.b32.xlu0 %v26_v19, %s543_s10  ;;  %v79_v18 = vld [vmem:[%s1258_s0 + $0x2a0] sm:$0xff]  ;;  %v78_v19 = vld [vmem:[%s1258_s0 + $0x298] sm:$0xff] }
  0x2a   :  { %226 = vrot.lane.b32.xlu1 %v29_v20, %s543_s10  ;;  %224 = vrot.lane.b32.xlu0 %v28_v21, %s543_s10 }
  0x2e   :  { %230 = vrot.lane.b32.xlu1 %v31_v22, %s543_s10  ;;  %228 = vrot.lane.b32.xlu0 %v30_v23, %s543_s10  ;;  %v81_v22 = vld [vmem:[%s1258_s0 + $0x2b0] sm:$0xff]  ;;  %v80_v23 = vld [vmem:[%s1258_s0 + $0x2a8] sm:$0xff] }
  0x32   :  { %234 = vrot.lane.b32.xlu1 %v33_v24, %s543_s10  ;;  %232 = vrot.lane.b32.xlu0 %v32_v25, %s543_s10 }
  0x36   :  { %238 = vrot.lane.b32.xlu1 %v35_v26, %s543_s10  ;;  %236 = vrot.lane.b32.xlu0 %v34_v27, %s543_s10  ;;  %v83_v26 = vld [vmem:[%s1258_s0 + $0x2c0] sm:$0xff]  ;;  %v82_v27 = vld [vmem:[%s1258_s0 + $0x2b8] sm:$0xff] }
  0x3a   :  { %242 = vrot.lane.b32.xlu1 %v37_v28, %s543_s10  ;;  %240 = vrot.lane.b32.xlu0 %v36_v29, %s543_s10 }
  0x3e   :  { %246 = vrot.lane.b32.xlu1 %v39_v30, %s543_s10  ;;  %244 = vrot.lane.b32.xlu0 %v38_v31, %s543_s10  ;;  %v85_v30 = vld [vmem:[%s1258_s0 + $0x2e0] sm:$0xff]  ;;  %v84_v31 = vld [vmem:[%s1258_s0 + $0x2c8] sm:$0xf] }
  0x42   :  { %250 = vrot.lane.b32.xlu1 %v41_v32, %s543_s10  ;;  %248 = vrot.lane.b32.xlu0 %v40_v33, %s543_s10 }
  0x46   :  { %254 = vrot.lane.b32.xlu1 %v43_v34, %s543_s10  ;;  %252 = vrot.lane.b32.xlu0 %v42_v35, %s543_s10  ;;  %v87_v34 = vld [vmem:[%s1258_s0 + $0x2f0] sm:$0xff]  ;;  %v86_v35 = vld [vmem:[%s1258_s0 + $0x2e8] sm:$0xff] }
  0x4a   :  { %258 = vrot.lane.b32.xlu1 %v45_v36, %s543_s10  ;;  %256 = vrot.lane.b32.xlu0 %v44_v37, %s543_s10 }
  0x4e   :  { %262 = vrot.lane.b32.xlu1 %v47_v38, %s543_s10  ;;  %260 = vrot.lane.b32.xlu0 %v46_v39, %s543_s10  ;;  %v89_v38 = vld [vmem:[%s1258_s0 + $0x300] sm:$0xff]  ;;  %v88_v39 = vld [vmem:[%s1258_s0 + $0x2f8] sm:$0xff] }
  0x52   :  { %266 = vrot.lane.b32.xlu1 %v49_v40, %s543_s10  ;;  %264 = vrot.lane.b32.xlu0 %v48_v41, %s543_s10 }
  0x56   :  { %270 = vrot.lane.b32.xlu1 %v51_v42, %s543_s10  ;;  %268 = vrot.lane.b32.xlu0 %v50_v43, %s543_s10  ;;  %v91_v42 = vld [vmem:[%s1258_s0 + $0x310] sm:$0xff]  ;;  %v90_v43 = vld [vmem:[%s1258_s0 + $0x308] sm:$0xff] }
  0x5a   :  { %274 = vrot.lane.b32.xlu1 %v53_v44, %s543_s10  ;;  %272 = vrot.lane.b32.xlu0 %v52_v45, %s543_s10 }
  0x5e   :  { %278 = vrot.lane.b32.xlu1 %v55_v46, %s543_s10  ;;  %276 = vrot.lane.b32.xlu0 %v54_v47, %s543_s10  ;;  %v93_v46 = vld [vmem:[%s1258_s0 + $0x320] sm:$0xff]  ;;  %v92_v47 = vld [vmem:[%s1258_s0 + $0x318] sm:$0xff] }
  0x62   :  { %282 = vrot.lane.b32.xlu1 %v57_v48, %s543_s10  ;;  %280 = vrot.lane.b32.xlu0 %v56_v49, %s543_s10 }
  0x66   :  { %286 = vrot.lane.b32.xlu1 %v59_v50, %s543_s10  ;;  %284 = vrot.lane.b32.xlu0 %v58_v51, %s543_s10  ;;  %v95_v50 = vld [vmem:[%s1258_s0 + $0x330] sm:$0xf]  ;;  %v94_v51 = vld [vmem:[%s1258_s0 + $0x328] sm:$0xff] }
  0x6a   :  { %290 = vrot.lane.b32.xlu1 %v61_v52, %s543_s10  ;;  %288 = vrot.lane.b32.xlu0 %v60_v53, %s543_s10 }
  0x6e   :  { %294 = vrot.lane.b32.xlu1 %v63_v54, %s543_s10  ;;  %292 = vrot.lane.b32.xlu0 %v62_v55, %s543_s10 }
  0x72   :  { %298 = vrot.lane.b32.xlu1 %v65_v56, %s543_s10  ;;  %296 = vrot.lane.b32.xlu0 %v64_v57, %s543_s10 }
  0x74   :  { %v189_v60 = vpop.permute.xlu1 %188  ;;  %v185_v61 = vpop.permute.xlu0 %184 }
  0x75   :  { %451 = vst.msk [vmem:[%s1259_s1 + $0x10] sm:$0xff] %vm448_vm0, %v189_v60  ;;  %449 = vst.msk [vmem:[%s1259_s1] sm:$0xff] %vm448_vm0, %v185_v61 }
  0x76   :  { %302 = vrot.lane.b32.xlu1 %v67_v58, %s543_s10  ;;  %300 = vrot.lane.b32.xlu0 %v66_v59, %s543_s10 }
  0x78   :  { %v191_v0 = vpop.permute.xlu1 %190  ;;  %v187_v1 = vpop.permute.xlu0 %186 }
  0x79   :  { %452 = vst.msk [vmem:[%s1259_s1 + $0x18] sm:$0xff] %vm448_vm0, %v191_v0  ;;  %450 = vst.msk [vmem:[%s1259_s1 + $0x8] sm:$0xff] %vm448_vm0, %v187_v1 }
  0x7a   :  { %306 = vrot.lane.b32.xlu1 %v69_v62, %s543_s10  ;;  %304 = vrot.lane.b32.xlu0 %v68_v63, %s543_s10 }
  0x7c   :  { %v195_v4 = vpop.permute.xlu1 %194  ;;  %v193_v5 = vpop.permute.xlu0 %192 }
  0x7d   :  { %454 = vst.msk [vmem:[%s1259_s1 + $0x28] sm:$0xff] %vm448_vm0, %v195_v4  ;;  %453 = vst.msk [vmem:[%s1259_s1 + $0x20] sm:$0xff] %vm448_vm0, %v193_v5 }
  0x7e   :  { %310 = vrot.lane.b32.xlu1 %v71_v2, %s543_s10  ;;  %308 = vrot.lane.b32.xlu0 %v70_v3, %s543_s10 }
  0x80   :  { %v199_v8 = vpop.permute.xlu1 %198  ;;  %v197_v9 = vpop.permute.xlu0 %196 }
  0x81   :  { %456 = vst.msk [vmem:[%s1259_s1 + $0x38] sm:$0xff] %vm448_vm0, %v199_v8  ;;  %455 = vst.msk [vmem:[%s1259_s1 + $0x30] sm:$0xff] %vm448_vm0, %v197_v9 }
  0x82   :  { %314 = vrot.lane.b32.xlu1 %v73_v6, %s543_s10  ;;  %312 = vrot.lane.b32.xlu0 %v72_v7, %s543_s10 }
  0x84   :  { %v203_v12 = vpop.permute.xlu1 %202  ;;  %v201_v13 = vpop.permute.xlu0 %200 }
  0x85   :  { %458 = vst.msk [vmem:[%s1259_s1 + $0x48] sm:$0xff] %vm448_vm0, %v203_v12  ;;  %457 = vst.msk [vmem:[%s1259_s1 + $0x40] sm:$0xff] %vm448_vm0, %v201_v13 }
  0x86   :  { %318 = vrot.lane.b32.xlu1 %v75_v10, %s543_s10  ;;  %316 = vrot.lane.b32.xlu0 %v74_v11, %s543_s10 }
  0x88   :  { %v207_v16 = vpop.permute.xlu1 %206  ;;  %v205_v17 = vpop.permute.xlu0 %204 }
  0x89   :  { %461 = vst.msk [vmem:[%s1259_s1 + $0x58] sm:$0xff] %vm448_vm0, %v207_v16 }
  0x8a   :  { %460 = vst.msk [vmem:[%s1259_s1 + $0x50] sm:$0xf] %vm459_vm1, %v205_v17  ;;  %322 = vrot.lane.b32.xlu1 %v77_v14, %s543_s10  ;;  %320 = vrot.lane.b32.xlu0 %v76_v15, %s543_s10 }
  0x8c   :  { %v211_v20 = vpop.permute.xlu1 %210  ;;  %v209_v21 = vpop.permute.xlu0 %208 }
  0x8d   :  { %463 = vst.msk [vmem:[%s1259_s1 + $0x68] sm:$0xff] %vm448_vm0, %v211_v20  ;;  %462 = vst.msk [vmem:[%s1259_s1 + $0x60] sm:$0xff] %vm448_vm0, %v209_v21 }
  0x8e   :  { %326 = vrot.lane.b32.xlu1 %v79_v18, %s543_s10  ;;  %324 = vrot.lane.b32.xlu0 %v78_v19, %s543_s10 }
  0x90   :  { %v215_v24 = vpop.permute.xlu1 %214  ;;  %v213_v25 = vpop.permute.xlu0 %212 }
  0x91   :  { %465 = vst.msk [vmem:[%s1259_s1 + $0x78] sm:$0xff] %vm448_vm0, %v215_v24  ;;  %464 = vst.msk [vmem:[%s1259_s1 + $0x70] sm:$0xff] %vm448_vm0, %v213_v25 }
  0x92   :  { %330 = vrot.lane.b32.xlu1 %v81_v22, %s543_s10  ;;  %328 = vrot.lane.b32.xlu0 %v80_v23, %s543_s10 }
  0x94   :  { %v219_v28 = vpop.permute.xlu1 %218  ;;  %v217_v29 = vpop.permute.xlu0 %216 }
  0x95   :  { %467 = vst.msk [vmem:[%s1259_s1 + $0x88] sm:$0xff] %vm448_vm0, %v219_v28  ;;  %466 = vst.msk [vmem:[%s1259_s1 + $0x80] sm:$0xff] %vm448_vm0, %v217_v29 }
  0x96   :  { %334 = vrot.lane.b32.xlu1 %v83_v26, %s543_s10  ;;  %332 = vrot.lane.b32.xlu0 %v82_v27, %s543_s10 }
  0x98   :  { %v223_v32 = vpop.permute.xlu1 %222  ;;  %v221_v33 = vpop.permute.xlu0 %220 }
  0x99   :  { %469 = vst.msk [vmem:[%s1259_s1 + $0x98] sm:$0xff] %vm448_vm0, %v223_v32  ;;  %468 = vst.msk [vmem:[%s1259_s1 + $0x90] sm:$0xff] %vm448_vm0, %v221_v33 }
  0x9a   :  { %338 = vrot.lane.b32.xlu1 %v85_v30, %s543_s10  ;;  %336 = vrot.lane.b32.xlu0 %v84_v31, %s543_s10 }
  0x9c   :  { %v227_v36 = vpop.permute.xlu1 %226  ;;  %v225_v37 = vpop.permute.xlu0 %224 }
  0x9d   :  { %471 = vst.msk [vmem:[%s1259_s1 + $0xa8] sm:$0xf] %vm459_vm1, %v227_v36 }
  0x9e   :  { %470 = vst.msk [vmem:[%s1259_s1 + $0xa0] sm:$0xff] %vm448_vm0, %v225_v37  ;;  %342 = vrot.lane.b32.xlu1 %v87_v34, %s543_s10  ;;  %340 = vrot.lane.b32.xlu0 %v86_v35, %s543_s10 }
  0xa0   :  { %v231_v40 = vpop.permute.xlu1 %230  ;;  %v229_v41 = vpop.permute.xlu0 %228 }
  0xa1   :  { %473 = vst.msk [vmem:[%s1259_s1 + $0xb8] sm:$0xff] %vm448_vm0, %v231_v40  ;;  %472 = vst.msk [vmem:[%s1259_s1 + $0xb0] sm:$0xff] %vm448_vm0, %v229_v41 }
  0xa2   :  { %346 = vrot.lane.b32.xlu1 %v89_v38, %s543_s10  ;;  %344 = vrot.lane.b32.xlu0 %v88_v39, %s543_s10 }
  0xa4   :  { %v235_v44 = vpop.permute.xlu1 %234  ;;  %v233_v45 = vpop.permute.xlu0 %232 }
  0xa5   :  { %475 = vst.msk [vmem:[%s1259_s1 + $0xc8] sm:$0xff] %vm448_vm0, %v235_v44  ;;  %474 = vst.msk [vmem:[%s1259_s1 + $0xc0] sm:$0xff] %vm448_vm0, %v233_v45 }
  0xa6   :  { %350 = vrot.lane.b32.xlu1 %v91_v42, %s543_s10  ;;  %348 = vrot.lane.b32.xlu0 %v90_v43, %s543_s10 }
  0xa8   :  { %v239_v48 = vpop.permute.xlu1 %238  ;;  %v237_v49 = vpop.permute.xlu0 %236 }
  0xa9   :  { %477 = vst.msk [vmem:[%s1259_s1 + $0xd8] sm:$0xff] %vm448_vm0, %v239_v48  ;;  %476 = vst.msk [vmem:[%s1259_s1 + $0xd0] sm:$0xff] %vm448_vm0, %v237_v49 }
  0xaa   :  { %354 = vrot.lane.b32.xlu1 %v93_v46, %s543_s10  ;;  %352 = vrot.lane.b32.xlu0 %v92_v47, %s543_s10 }
  0xac   :  { %v243_v52 = vpop.permute.xlu1 %242  ;;  %v241_v53 = vpop.permute.xlu0 %240 }
  0xad   :  { %479 = vst.msk [vmem:[%s1259_s1 + $0xe8] sm:$0xff] %vm448_vm0, %v243_v52  ;;  %478 = vst.msk [vmem:[%s1259_s1 + $0xe0] sm:$0xff] %vm448_vm0, %v241_v53 }
  0xae   :  { %358 = vrot.lane.b32.xlu1 %v95_v50, %s543_s10  ;;  %356 = vrot.lane.b32.xlu0 %v94_v51, %s543_s10 }
  0xb0   :  { %v247_v54 = vpop.permute.xlu1 %246  ;;  %v245_v55 = vpop.permute.xlu0 %244 }
  0xb1   :  { %481 = vst.msk [vmem:[%s1259_s1 + $0xf8] sm:$0xff] %vm448_vm0, %v247_v54  ;;  %480 = vst.msk [vmem:[%s1259_s1 + $0xf0] sm:$0xff] %vm448_vm0, %v245_v55 }
  0xb4   :  { %v251_v56 = vpop.permute.xlu1 %250  ;;  %v249_v57 = vpop.permute.xlu0 %248 }
  0xb5   :  { %483 = vst.msk [vmem:[%s1259_s1 + $0x108] sm:$0xff] %vm448_vm0, %v251_v56 }
  0xb6   :  { %482 = vst.msk [vmem:[%s1259_s1 + $0x100] sm:$0xf] %vm459_vm1, %v249_v57 }
  0xb8   :  { %v255_v58 = vpop.permute.xlu1 %254  ;;  %v253_v59 = vpop.permute.xlu0 %252 }
  0xb9   :  { %485 = vst.msk [vmem:[%s1259_s1 + $0x118] sm:$0xff] %vm448_vm0, %v255_v58  ;;  %484 = vst.msk [vmem:[%s1259_s1 + $0x110] sm:$0xff] %vm448_vm0, %v253_v59 }
  0xbc   :  { %v259_v60 = vpop.permute.xlu1 %258  ;;  %v257_v61 = vpop.permute.xlu0 %256 }
  0xbd   :  { %487 = vst.msk [vmem:[%s1259_s1 + $0x128] sm:$0xff] %vm448_vm0, %v259_v60  ;;  %486 = vst.msk [vmem:[%s1259_s1 + $0x120] sm:$0xff] %vm448_vm0, %v257_v61 }
  0xc0   :  { %v263_v62 = vpop.permute.xlu1 %262  ;;  %v261_v63 = vpop.permute.xlu0 %260 }
  0xc1   :  { %489 = vst.msk [vmem:[%s1259_s1 + $0x138] sm:$0xff] %vm448_vm0, %v263_v62  ;;  %488 = vst.msk [vmem:[%s1259_s1 + $0x130] sm:$0xff] %vm448_vm0, %v261_v63 }
  0xc4   :  { %v267_v0 = vpop.permute.xlu1 %266  ;;  %v265_v1 = vpop.permute.xlu0 %264 }
  0xc5   :  { %491 = vst.msk [vmem:[%s1259_s1 + $0x148] sm:$0xff] %vm448_vm0, %v267_v0  ;;  %490 = vst.msk [vmem:[%s1259_s1 + $0x140] sm:$0xff] %vm448_vm0, %v265_v1 }
  0xc8   :  { %v271_v2 = vpop.permute.xlu1 %270  ;;  %v269_v3 = vpop.permute.xlu0 %268 }
  0xc9   :  { %493 = vst.msk [vmem:[%s1259_s1 + $0x158] sm:$0xf] %vm459_vm1, %v271_v2 }
  0xca   :  { %492 = vst.msk [vmem:[%s1259_s1 + $0x150] sm:$0xff] %vm448_vm0, %v269_v3 }
  0xcc   :  { %v275_v4 = vpop.permute.xlu1 %274  ;;  %v273_v5 = vpop.permute.xlu0 %272 }
  0xcd   :  { %495 = vst.msk [vmem:[%s1259_s1 + $0x168] sm:$0xff] %vm448_vm0, %v275_v4  ;;  %494 = vst.msk [vmem:[%s1259_s1 + $0x160] sm:$0xff] %vm448_vm0, %v273_v5 }
  0xd0   :  { %v279_v6 = vpop.permute.xlu1 %278  ;;  %v277_v7 = vpop.permute.xlu0 %276 }
  0xd1   :  { %497 = vst.msk [vmem:[%s1259_s1 + $0x178] sm:$0xff] %vm448_vm0, %v279_v6  ;;  %496 = vst.msk [vmem:[%s1259_s1 + $0x170] sm:$0xff] %vm448_vm0, %v277_v7 }
  0xd4   :  { %v283_v8 = vpop.permute.xlu1 %282  ;;  %v281_v9 = vpop.permute.xlu0 %280 }
  0xd5   :  { %499 = vst.msk [vmem:[%s1259_s1 + $0x188] sm:$0xff] %vm448_vm0, %v283_v8  ;;  %498 = vst.msk [vmem:[%s1259_s1 + $0x180] sm:$0xff] %vm448_vm0, %v281_v9 }
  0xd8   :  { %v287_v10 = vpop.permute.xlu1 %286  ;;  %v285_v11 = vpop.permute.xlu0 %284 }
  0xd9   :  { %501 = vst.msk [vmem:[%s1259_s1 + $0x198] sm:$0xff] %vm448_vm0, %v287_v10  ;;  %500 = vst.msk [vmem:[%s1259_s1 + $0x190] sm:$0xff] %vm448_vm0, %v285_v11 }
  0xdc   :  { %v291_v12 = vpop.permute.xlu1 %290  ;;  %v289_v13 = vpop.permute.xlu0 %288 }
  0xdd   :  { %503 = vst.msk [vmem:[%s1259_s1 + $0x1a8] sm:$0xff] %vm448_vm0, %v291_v12  ;;  %502 = vst.msk [vmem:[%s1259_s1 + $0x1a0] sm:$0xff] %vm448_vm0, %v289_v13 }
  0xe0   :  { %v295_v14 = vpop.permute.xlu1 %294  ;;  %v293_v15 = vpop.permute.xlu0 %292 }
  0xe1   :  { %505 = vst.msk [vmem:[%s1259_s1 + $0x1b8] sm:$0xff] %vm448_vm0, %v295_v14 }
  0xe2   :  { %504 = vst.msk [vmem:[%s1259_s1 + $0x1b0] sm:$0xf] %vm459_vm1, %v293_v15 }
  0xe4   :  { %v299_v16 = vpop.permute.xlu1 %298  ;;  %v297_v17 = vpop.permute.xlu0 %296 }
  0xe5   :  { %507 = vst.msk [vmem:[%s1259_s1 + $0x1c8] sm:$0xff] %vm448_vm0, %v299_v16  ;;  %506 = vst.msk [vmem:[%s1259_s1 + $0x1c0] sm:$0xff] %vm448_vm0, %v297_v17 }
  0xe8   :  { %v303_v18 = vpop.permute.xlu1 %302  ;;  %v301_v19 = vpop.permute.xlu0 %300 }
  0xe9   :  { %509 = vst.msk [vmem:[%s1259_s1 + $0x1d8] sm:$0xff] %vm448_vm0, %v303_v18  ;;  %508 = vst.msk [vmem:[%s1259_s1 + $0x1d0] sm:$0xff] %vm448_vm0, %v301_v19 }
  0xec   :  { %v307_v20 = vpop.permute.xlu1 %306  ;;  %v305_v21 = vpop.permute.xlu0 %304 }
  0xed   :  { %511 = vst.msk [vmem:[%s1259_s1 + $0x1e8] sm:$0xff] %vm448_vm0, %v307_v20  ;;  %510 = vst.msk [vmem:[%s1259_s1 + $0x1e0] sm:$0xff] %vm448_vm0, %v305_v21 }
  0xf0   :  { %v311_v22 = vpop.permute.xlu1 %310  ;;  %v309_v23 = vpop.permute.xlu0 %308 }
  0xf1   :  { %513 = vst.msk [vmem:[%s1259_s1 + $0x1f8] sm:$0xff] %vm448_vm0, %v311_v22  ;;  %512 = vst.msk [vmem:[%s1259_s1 + $0x1f0] sm:$0xff] %vm448_vm0, %v309_v23 }
  0xf4   :  { %v315_v24 = vpop.permute.xlu1 %314  ;;  %v313_v25 = vpop.permute.xlu0 %312 }
  0xf5   :  { %515 = vst.msk [vmem:[%s1259_s1 + $0x208] sm:$0xf] %vm459_vm1, %v315_v24 }
  0xf6   :  { %514 = vst.msk [vmem:[%s1259_s1 + $0x200] sm:$0xff] %vm448_vm0, %v313_v25 }
  0xf8   :  { %v319_v26 = vpop.permute.xlu1 %318  ;;  %v317_v27 = vpop.permute.xlu0 %316 }
  0xf9   :  { %517 = vst.msk [vmem:[%s1259_s1 + $0x218] sm:$0xff] %vm448_vm0, %v319_v26  ;;  %516 = vst.msk [vmem:[%s1259_s1 + $0x210] sm:$0xff] %vm448_vm0, %v317_v27 }
  0xfc   :  { %v323_v28 = vpop.permute.xlu1 %322  ;;  %v321_v29 = vpop.permute.xlu0 %320 }
  0xfd   :  { %519 = vst.msk [vmem:[%s1259_s1 + $0x228] sm:$0xff] %vm448_vm0, %v323_v28  ;;  %518 = vst.msk [vmem:[%s1259_s1 + $0x220] sm:$0xff] %vm448_vm0, %v321_v29 }
 0x100   :  { %v327_v30 = vpop.permute.xlu1 %326  ;;  %v325_v31 = vpop.permute.xlu0 %324 }
 0x101   :  { %521 = vst.msk [vmem:[%s1259_s1 + $0x238] sm:$0xff] %vm448_vm0, %v327_v30  ;;  %520 = vst.msk [vmem:[%s1259_s1 + $0x230] sm:$0xff] %vm448_vm0, %v325_v31 }
 0x104   :  { %v331_v32 = vpop.permute.xlu1 %330  ;;  %v329_v33 = vpop.permute.xlu0 %328 }
 0x105   :  { %523 = vst.msk [vmem:[%s1259_s1 + $0x248] sm:$0xff] %vm448_vm0, %v331_v32  ;;  %522 = vst.msk [vmem:[%s1259_s1 + $0x240] sm:$0xff] %vm448_vm0, %v329_v33 }
 0x108   :  { %v335_v34 = vpop.permute.xlu1 %334  ;;  %v333_v35 = vpop.permute.xlu0 %332 }
 0x109   :  { %525 = vst.msk [vmem:[%s1259_s1 + $0x258] sm:$0xff] %vm448_vm0, %v335_v34  ;;  %524 = vst.msk [vmem:[%s1259_s1 + $0x250] sm:$0xff] %vm448_vm0, %v333_v35 }
 0x10c   :  { %v339_v36 = vpop.permute.xlu1 %338  ;;  %v337_v37 = vpop.permute.xlu0 %336 }
 0x10d   :  { %527 = vst.msk [vmem:[%s1259_s1 + $0x268] sm:$0xff] %vm448_vm0, %v339_v36 }
 0x10e   :  { %526 = vst.msk [vmem:[%s1259_s1 + $0x260] sm:$0xf] %vm459_vm1, %v337_v37 }
 0x110   :  { %v343_v38 = vpop.permute.xlu1 %342  ;;  %v341_v39 = vpop.permute.xlu0 %340 }
 0x111   :  { %529 = vst.msk [vmem:[%s1259_s1 + $0x278] sm:$0xff] %vm448_vm0, %v343_v38  ;;  %528 = vst.msk [vmem:[%s1259_s1 + $0x270] sm:$0xff] %vm448_vm0, %v341_v39 }
 0x114   :  { %v347_v40 = vpop.permute.xlu1 %346  ;;  %v345_v41 = vpop.permute.xlu0 %344 }
 0x115   :  { %531 = vst.msk [vmem:[%s1259_s1 + $0x288] sm:$0xff] %vm448_vm0, %v347_v40  ;;  %530 = vst.msk [vmem:[%s1259_s1 + $0x280] sm:$0xff] %vm448_vm0, %v345_v41 }
 0x118   :  { %v351_v42 = vpop.permute.xlu1 %350  ;;  %v349_v43 = vpop.permute.xlu0 %348 }
 0x119   :  { %533 = vst.msk [vmem:[%s1259_s1 + $0x298] sm:$0xff] %vm448_vm0, %v351_v42  ;;  %532 = vst.msk [vmem:[%s1259_s1 + $0x290] sm:$0xff] %vm448_vm0, %v349_v43 }
 0x11c   :  { %v355_v44 = vpop.permute.xlu1 %354  ;;  %v353_v45 = vpop.permute.xlu0 %352 }
 0x11d   :  { %535 = vst.msk [vmem:[%s1259_s1 + $0x2a8] sm:$0xff] %vm448_vm0, %v355_v44  ;;  %534 = vst.msk [vmem:[%s1259_s1 + $0x2a0] sm:$0xff] %vm448_vm0, %v353_v45 }
 0x120   :  { %v359_v46 = vpop.permute.xlu1 %358  ;;  %v357_v47 = vpop.permute.xlu0 %356 }
 0x121   :  { %537 = vst.msk [vmem:[%s1259_s1 + $0x2b8] sm:$0xf] %vm459_vm1, %v359_v46 }
 0x122   :  { %536 = vst.msk [vmem:[%s1259_s1 + $0x2b0] sm:$0xff] %vm448_vm0, %v357_v47 }

</bundles_post_ra>
